<compile_context>
chip_gen: v6e
topology: v6e:2x2x1
jax: 0.10.0
libtpu: 0.0.40
codegen_flags: <defaults>
</compile_context>

<pallas_src>
import jax
import jax.numpy as jnp
from jax.experimental import pallas as pl
from jax.experimental.pallas import tpu as pltpu

_LANE = 128


def _reward_dreamer_kernel(xt_ref, w1_ref, b1_ref, w2_ref, b2_ref,
                           w3_ref, b3_ref, o_ref):
    # fc1 + ReLU:  [H, S] @ [S, tile_b] -> [H, tile_b]   (MXU, f32 accumulate)
    h = jnp.dot(w1_ref[...], xt_ref[...], preferred_element_type=jnp.float32)
    h = jnp.maximum(h + b1_ref[...], 0.0)
    # fc2 + ReLU:  [H, H] @ [H, tile_b] -> [H, tile_b]   (MXU, f32 accumulate)
    h = jnp.dot(w2_ref[...], h, preferred_element_type=jnp.float32)
    h = jnp.maximum(h + b2_ref[...], 0.0)
    # fc3 (out_features == 1): VPU multiply + cross-sublane (XLU) reduce instead
    # of a wasteful N=1 MXU matmul. Result lands lane-dense as [1, tile_b].
    out = jnp.sum(h * w3_ref[...], axis=0, keepdims=True) + b3_ref[...]
    o_ref[...] = out.astype(o_ref.dtype)


def reward_dreamer_forward(x, params, *, tile_b=1024):
    """x: [B, state_size] float32. params: PyTorch-layout weights/biases."""
    B, S = x.shape
    H = params["w1"].shape[0]          # 128

    # Batch tile: multiple of 128 lanes, clamped so tiny batches use one step.
    tile_b = max(_LANE, (tile_b // _LANE) * _LANE)
    tile_b = min(tile_b, ((B + _LANE - 1) // _LANE) * _LANE)
    num_tiles = pl.cdiv(B, tile_b)
    B_pad = num_tiles * tile_b

    # Transposed input: [S, B_pad]; padded batch columns are discarded later.
    x_t = jnp.zeros((S, B_pad), x.dtype).at[:, :B].set(x.T)

    # Layout plumbing outside the kernel (cheap XLA ops on tiny arrays):
    w1 = params["w1"]                  # [H, S]
    b1 = params["b1"][:, None]         # [H, 1]
    w2 = params["w2"]                  # [H, H]
    b2 = params["b2"][:, None]         # [H, 1]
    w3 = params["w3"].T                # [H, 1]  (fc3 weight as a column)
    b3 = params["b3"].reshape(1, 1)    # [1, 1]

    full = lambda i: (0, 0)            # weights/biases: same block every step

    out_t = pl.pallas_call(
        _reward_dreamer_kernel,
        out_shape=jax.ShapeDtypeStruct((1, B_pad), jnp.float32),
        grid_spec=pltpu.PrefetchScalarGridSpec(
            num_scalar_prefetch=0,
            grid=(num_tiles,),
            in_specs=[
                pl.BlockSpec((S, tile_b), lambda i: (0, i)),   # x^T tile (lane-dense)
                pl.BlockSpec((H, S), full),                    # w1
                pl.BlockSpec((H, 1), full),                    # b1
                pl.BlockSpec((H, H), full),                    # w2
                pl.BlockSpec((H, 1), full),                    # b2
                pl.BlockSpec((H, 1), full),                    # w3 column
                pl.BlockSpec((1, 1), full),                    # b3
            ],
            out_specs=pl.BlockSpec((1, tile_b), lambda i: (0, i)),  # lane-dense out
        ),
        compiler_params=pltpu.CompilerParams(
            dimension_semantics=("parallel",),
            vmem_limit_bytes=32 * 1024 * 1024,
        ),
    )(x_t, w1, b1, w2, b2, w3, b3)

    # TODO(synk): invariant weight specs could use pipeline_mode=pl.Buffered(1)
    # to drop the redundant second buffer; skipped (tiny VMEM footprint here).
    return out_t[0, :B].reshape(B, 1)


def init_params(key, state_size, hidden=128):
    """Deterministic init matching nn.Linear shapes (PyTorch layout)."""
    ks = jax.random.split(key, 6)

    def linear(kw, kb, fan_in, fan_out):
        bound = 1.0 / jnp.sqrt(jnp.float32(fan_in))
        w = jax.random.uniform(kw, (fan_out, fan_in), jnp.float32, -bound, bound)
        b = jax.random.uniform(kb, (fan_out,), jnp.float32, -bound, bound)
        return w, b

    w1, b1 = linear(ks[0], ks[1], state_size, hidden)
    w2, b2 = linear(ks[2], ks[3], hidden, hidden)
    w3, b3 = linear(ks[4], ks[5], hidden, 1)
    return {"w1": w1, "b1": b1, "w2": w2, "b2": b2, "w3": w3, "b3": b3}


def reference_forward(x, p):
    h = jax.nn.relu(x @ p["w1"].T + p["b1"])
    h = jax.nn.relu(h @ p["w2"].T + p["b2"])
    return h @ p["w3"].T + p["b3"]


if __name__ == "__main__":
    state_size = 3          # pendulum state: (cos theta, sin theta, theta_dot)
    batch = 32

    key = jax.random.PRNGKey(0)
    k_x, k_p = jax.random.split(key)
    x = jax.random.normal(k_x, (batch, state_size), jnp.float32)
    params = init_params(k_p, state_size)

    out = reward_dreamer_forward(x, params)
    out = jax.block_until_ready(out)

    ref = reference_forward(x, params)
    assert out.shape == (batch, 1)
    assert jnp.allclose(out, ref, atol=1e-5, rtol=1e-5), "mismatch vs reference"

    print("KERNEL_OK")
</pallas_src>

<mosaic_0001>
module attributes {stable_mosaic.version = 11 : i64} {
  func.func @_reward_dreamer_kernel(%arg0: i32, %arg1: memref<3x128xf32, #tpu.memory_space<vmem>>, %arg2: memref<128x3xf32, #tpu.memory_space<vmem>>, %arg3: memref<128x1xf32, #tpu.memory_space<vmem>>, %arg4: memref<128x128xf32, #tpu.memory_space<vmem>>, %arg5: memref<128x1xf32, #tpu.memory_space<vmem>>, %arg6: memref<128x1xf32, #tpu.memory_space<vmem>>, %arg7: memref<1x1xf32, #tpu.memory_space<vmem>>, %arg8: memref<1x128xf32, #tpu.memory_space<vmem>>) attributes {dimension_semantics = [#tpu.dimension_semantics<parallel>], iteration_bounds = array<i64: 1>, scalar_prefetch = 0 : i64, scratch_operands = 0 : i64, tpu.core_type = #tpu.core_type<tc>, window_params = [{transform_indices = @transform_0, window_bounds = array<i64: 3, 128>}, {pipeline_mode = #tpu.pipeline_mode<synchronous>, transform_indices = @transform_1, window_bounds = array<i64: 128, 3>}, {pipeline_mode = #tpu.pipeline_mode<synchronous>, transform_indices = @transform_2, window_bounds = array<i64: 128, 1>}, {pipeline_mode = #tpu.pipeline_mode<synchronous>, transform_indices = @transform_3, window_bounds = array<i64: 128, 128>}, {pipeline_mode = #tpu.pipeline_mode<synchronous>, transform_indices = @transform_4, window_bounds = array<i64: 128, 1>}, {pipeline_mode = #tpu.pipeline_mode<synchronous>, transform_indices = @transform_5, window_bounds = array<i64: 128, 1>}, {pipeline_mode = #tpu.pipeline_mode<synchronous>, transform_indices = @transform_6, window_bounds = array<i64: 1, 1>}, {transform_indices = @transform_7, window_bounds = array<i64: 1, 128>}]} {
    %c0 = arith.constant 0 : index
    %c0_0 = arith.constant 0 : index
    %0 = vector.load %arg2[%c0, %c0_0] : memref<128x3xf32, #tpu.memory_space<vmem>>, vector<128x3xf32>
    %c0_1 = arith.constant 0 : index
    %c0_2 = arith.constant 0 : index
    %1 = vector.load %arg1[%c0_1, %c0_2] : memref<3x128xf32, #tpu.memory_space<vmem>>, vector<3x128xf32>
    %cst = arith.constant dense<0.000000e+00> : vector<128x128xf32>
    %2 = tpu.matmul %0, %1, %cst {dimension_numbers = #tpu.dot_dimension_numbers<[1], [0], [0], [1], [0, 0, 1, 1], [], []>} : vector<128x3xf32>, vector<3x128xf32>, vector<128x128xf32> -> vector<128x128xf32>
    %c0_3 = arith.constant 0 : index
    %c0_4 = arith.constant 0 : index
    %3 = vector.load %arg3[%c0_3, %c0_4] : memref<128x1xf32, #tpu.memory_space<vmem>>, vector<128x1xf32>
    %4 = vector.broadcast %3 : vector<128x1xf32> to vector<128x128xf32>
    %5 = arith.addf %2, %4 : vector<128x128xf32>
    %cst_5 = arith.constant 0.000000e+00 : f32
    %6 = vector.broadcast %cst_5 : f32 to vector<128x128xf32>
    %7 = arith.maximumf %5, %6 : vector<128x128xf32>
    %c0_6 = arith.constant 0 : index
    %c0_7 = arith.constant 0 : index
    %8 = vector.load %arg4[%c0_6, %c0_7] : memref<128x128xf32, #tpu.memory_space<vmem>>, vector<128x128xf32>
    %cst_8 = arith.constant dense<0.000000e+00> : vector<128x128xf32>
    %9 = tpu.matmul %8, %7, %cst_8 {dimension_numbers = #tpu.dot_dimension_numbers<[1], [0], [0], [1], [0, 0, 1, 1], [], []>} : vector<128x128xf32>, vector<128x128xf32>, vector<128x128xf32> -> vector<128x128xf32>
    %c0_9 = arith.constant 0 : index
    %c0_10 = arith.constant 0 : index
    %10 = vector.load %arg5[%c0_9, %c0_10] : memref<128x1xf32, #tpu.memory_space<vmem>>, vector<128x1xf32>
    %11 = vector.broadcast %10 : vector<128x1xf32> to vector<128x128xf32>
    %12 = arith.addf %9, %11 : vector<128x128xf32>
    %cst_11 = arith.constant 0.000000e+00 : f32
    %13 = vector.broadcast %cst_11 : f32 to vector<128x128xf32>
    %14 = arith.maximumf %12, %13 : vector<128x128xf32>
    %c0_12 = arith.constant 0 : index
    %c0_13 = arith.constant 0 : index
    %15 = vector.load %arg6[%c0_12, %c0_13] : memref<128x1xf32, #tpu.memory_space<vmem>>, vector<128x1xf32>
    %16 = vector.broadcast %15 : vector<128x1xf32> to vector<128x128xf32>
    %17 = arith.mulf %14, %16 : vector<128x128xf32>
    %cst_14 = arith.constant dense<0.000000e+00> : vector<128xf32>
    %18 = vector.multi_reduction <add>, %17, %cst_14 [0] : vector<128x128xf32> to vector<128xf32>
    %19 = vector.shape_cast %18 : vector<128xf32> to vector<1x128xf32>
    %c0_15 = arith.constant 0 : index
    %c0_16 = arith.constant 0 : index
    %20 = vector.load %arg7[%c0_15, %c0_16] : memref<1x1xf32, #tpu.memory_space<vmem>>, vector<1x1xf32>
    %21 = vector.broadcast %20 : vector<1x1xf32> to vector<1x128xf32>
    %22 = arith.addf %19, %21 : vector<1x128xf32>
    %c0_17 = arith.constant 0 : index
    %c0_18 = arith.constant 0 : index
    %23 = vector.load %arg8[%c0_17, %c0_18] : memref<1x128xf32, #tpu.memory_space<vmem>>, vector<1x128xf32>
    tpu.vector_store %arg8[%c0_17, %c0_18], %22 {strides = array<i32>} : memref<1x128xf32, #tpu.memory_space<vmem>>, vector<1x128xf32>,
    return
  }
  func.func @transform_0(%arg0: i32) -> (i32, i32) {
    %c0_i32 = arith.constant 0 : i32
    %c0_i32_0 = arith.constant 0 : i32
    return %c0_i32, %arg0 : i32, i32
  }
  func.func @transform_1(%arg0: i32) -> (i32, i32) {
    %c0_i32 = arith.constant 0 : i32
    %c0_i32_0 = arith.constant 0 : i32
    %c0_i32_1 = arith.constant 0 : i32
    return %c0_i32, %c0_i32_0 : i32, i32
  }
  func.func @transform_2(%arg0: i32) -> (i32, i32) {
    %c0_i32 = arith.constant 0 : i32
    %c0_i32_0 = arith.constant 0 : i32
    %c0_i32_1 = arith.constant 0 : i32
    return %c0_i32, %c0_i32_0 : i32, i32
  }
  func.func @transform_3(%arg0: i32) -> (i32, i32) {
    %c0_i32 = arith.constant 0 : i32
    %c0_i32_0 = arith.constant 0 : i32
    %c0_i32_1 = arith.constant 0 : i32
    return %c0_i32, %c0_i32_0 : i32, i32
  }
  func.func @transform_4(%arg0: i32) -> (i32, i32) {
    %c0_i32 = arith.constant 0 : i32
    %c0_i32_0 = arith.constant 0 : i32
    %c0_i32_1 = arith.constant 0 : i32
    return %c0_i32, %c0_i32_0 : i32, i32
  }
  func.func @transform_5(%arg0: i32) -> (i32, i32) {
    %c0_i32 = arith.constant 0 : i32
    %c0_i32_0 = arith.constant 0 : i32
    %c0_i32_1 = arith.constant 0 : i32
    return %c0_i32, %c0_i32_0 : i32, i32
  }
  func.func @transform_6(%arg0: i32) -> (i32, i32) {
    %c0_i32 = arith.constant 0 : i32
    %c0_i32_0 = arith.constant 0 : i32
    %c0_i32_1 = arith.constant 0 : i32
    return %c0_i32, %c0_i32_0 : i32, i32
  }
  func.func @transform_7(%arg0: i32) -> (i32, i32) {
    %c0_i32 = arith.constant 0 : i32
    %c0_i32_0 = arith.constant 0 : i32
    return %c0_i32, %arg0 : i32, i32
  }
}

</mosaic_0001>

<bundles_post_ra>
// kernel: tpu_custom_call.1
= control target key start
LH: loop header
LB: loop body
LE: loop exit
PB: predicated region body
PF: predicated region fallthrough
CT: control target
= control target key end

     0   :  { %s1319_s0 = inlined_call_operand.vmem [shape: f32[3,128], index: 0, kind: input, shape index: {}]   ;;  %s1320_s1 = inlined_call_operand.vmem [shape: f32[128,3], index: 1, kind: input, shape index: {}]   ;;  %s1321_s2 = inlined_call_operand.vmem [shape: f32[128,1], index: 2, kind: input, shape index: {}]   ;;  %s1322_s3 = inlined_call_operand.vmem [shape: f32[128,128], index: 3, kind: input, shape index: {}]   ;;  %s1323_s4 = inlined_call_operand.vmem [shape: f32[128,1], index: 4, kind: input, shape index: {}]   ;;  %s1324_s5 = inlined_call_operand.vmem [shape: f32[128,1], index: 5, kind: input, shape index: {}]   ;;  %s1325_s6 = inlined_call_operand.<no memory space> [shape: f32[1,1], index: 6, kind: input, shape index: {}]   ;;  %s1326_s7 = inlined_call_operand.hbm [shape: f32[1,128], index: 7, kind: output, shape index: {}]  }
   0x1   :  { %v12_v0 = vstv %s1325_s6 }
   0x2   :  { %13 = vst [vmem:[#allocation2] sm:$0x1] %v12_v0 }
   0x3   :  { %v45_v1 = vld [vmem:[%s1319_s0] sm:$0x7]  ;;  %vm191_vm0 = vcmask 1042432   ;;  %v61_v2 = vld [vmem:[%s1321_s2 + $0x78] sm:$0xff]  ;;  %v994_v4 = vmov 0   ;;  %vm142_vm1 = vcmask 23552  }
   0x4   :  { %v29_v3 = vld [vmem:[%s1320_s1] sm:$0xff]  ;;  %970 = vset.pattern.permute.xlu0 %v994_v4  ;;  %854 = vmatprep.subr.msk.mxu0 %vm191_vm0, %v45_v1  ;;  %v30_v5 = vld [vmem:[%s1320_s1 + $0x8] sm:$0xff]  ;;  %v31_v6 = vld [vmem:[%s1320_s1 + $0x10] sm:$0xff] }
   0x5   :  { %139 = vperm.xlu0 %970, %v61_v2   ;;  %855 = vmatpush3.msk.msra.mxu0 %vm191_vm0, %v45_v1  ;;  %v59_v7 = vld [vmem:[%s1321_s2 + $0x68] sm:$0xff]  ;;  %v60_v8 = vld [vmem:[%s1321_s2 + $0x70] sm:$0xff]  ;;  %v32_v9 = vld [vmem:[%s1320_s1 + $0x18] sm:$0xff] }
   0x6   :  { %856 = vmatprep.mubr.msk.f32.mxu0 %vm142_vm1, %v29_v3  ;;  %971 = vset.pattern.permute.xlu1 %v994_v4  ;;  %v58_v10 = vld [vmem:[%s1321_s2 + $0x60] sm:$0xff]  ;;  %v57_v12 = vld [vmem:[%s1321_s2 + $0x58] sm:$0xff]  ;;  %v34_v13 = vld [vmem:[%s1320_s1 + $0x28] sm:$0xff] }
   0x7   :  { %857 = vmatmul.mubr.msk.f32.vlgmr.msra.gmra.mxu0 %vm142_vm1, %v30_v5  ;;  %129 = vperm.xlu1 %971, %v59_v7   ;;  %v33_v11 = vld [vmem:[%s1320_s1 + $0x20] sm:$0xff]  ;;  %v56_v14 = vld [vmem:[%s1321_s2 + $0x50] sm:$0xff]  ;;  %v55_v16 = vld [vmem:[%s1321_s2 + $0x48] sm:$0xff] }
   0x8   :  { %859 = vmatprep.mubr.msk.f32.mxu0 %vm142_vm1, %v31_v6  ;;  %v35_v15 = vld [vmem:[%s1320_s1 + $0x30] sm:$0xff]  ;;  %v36_v17 = vld [vmem:[%s1320_s1 + $0x38] sm:$0xff]  ;;  %v54_v18 = vld [vmem:[%s1321_s2 + $0x40] sm:$0xff] }
   0x9   :  { %134 = vperm.xlu0 %970, %v60_v8   ;;  %v37_v19 = vld [vmem:[%s1320_s1 + $0x40] sm:$0xff]  ;;  %v53_v20 = vld [vmem:[%s1321_s2 + $0x38] sm:$0xff]  ;;  %v38_v21 = vld [vmem:[%s1320_s1 + $0x48] sm:$0xff] }
   0xa   :  { %v52_v22 = vld [vmem:[%s1321_s2 + $0x30] sm:$0xff]  ;;  %v51_v24 = vld [vmem:[%s1321_s2 + $0x28] sm:$0xff]  ;;  %v40_v25 = vld [vmem:[%s1320_s1 + $0x58] sm:$0xff] }
   0xb   :  { %860 = vmatmul.mubr.msk.f32.gmra.mxu0 %vm142_vm1, %v32_v9  ;;  %124 = vperm.xlu1 %971, %v58_v10   ;;  %v39_v23 = vld [vmem:[%s1320_s1 + $0x50] sm:$0xff]  ;;  %v50_v26 = vld [vmem:[%s1321_s2 + $0x20] sm:$0xff] }
   0xc   :  { %862 = vmatprep.mubr.msk.f32.mxu0 %vm142_vm1, %v33_v11  ;;  %v41_v27 = vld [vmem:[%s1320_s1 + $0x60] sm:$0xff] }
   0xd   :  { %119 = vperm.xlu0 %970, %v57_v12  }
   0xf   :  { %863 = vmatmul.mubr.msk.f32.gmra.mxu0 %vm142_vm1, %v34_v13  ;;  %114 = vperm.xlu1 %971, %v56_v14  }
  0x10   :  { %865 = vmatprep.mubr.msk.f32.mxu0 %vm142_vm1, %v35_v15 }
  0x11   :  { %109 = vperm.xlu0 %970, %v55_v16  }
  0x13   :  { %866 = vmatmul.mubr.msk.f32.gmra.mxu0 %vm142_vm1, %v36_v17  ;;  %104 = vperm.xlu1 %971, %v54_v18  }
  0x14   :  { %868 = vmatprep.mubr.msk.f32.mxu0 %vm142_vm1, %v37_v19 }
  0x15   :  { %99 = vperm.xlu0 %970, %v53_v20  }
  0x17   :  { %869 = vmatmul.mubr.msk.f32.gmra.mxu0 %vm142_vm1, %v38_v21  ;;  %94 = vperm.xlu1 %971, %v52_v22  }
  0x18   :  { %871 = vmatprep.mubr.msk.f32.mxu0 %vm142_vm1, %v39_v23 }
  0x19   :  { %89 = vperm.xlu0 %970, %v51_v24  }
  0x1a   :  { %14 = vsyncpa [#allocation4], 0  ;;  %v49_v28 = vld [vmem:[%s1321_s2 + $0x18] sm:$0xff]  ;;  %v42_v29 = vld [vmem:[%s1320_s1 + $0x68] sm:$0xff] }
  0x1b   :  { %872 = vmatmul.mubr.msk.f32.gmra.mxu0 %vm142_vm1, %v40_v25  ;;  %84 = vperm.xlu1 %971, %v50_v26   ;;  %v48_v30 = vld [vmem:[%s1321_s2 + $0x10] sm:$0xff]  ;;  %v47_v32 = vld [vmem:[%s1321_s2 + $0x8] sm:$0xff]  ;;  %v44_v33 = vld [vmem:[%s1320_s1 + $0x78] sm:$0xff] }
  0x1c   :  { %874 = vmatprep.mubr.msk.f32.mxu0 %vm142_vm1, %v41_v27  ;;  %v43_v31 = vld [vmem:[%s1320_s1 + $0x70] sm:$0xff]  ;;  %v46_v34 = vld [vmem:[%s1321_s2] sm:$0xff]  ;;  %v373_v36 = vld [vmem:[%s1323_s4 + $0x8] sm:$0xff] }
  0x1d   :  { %79 = vperm.xlu0 %970, %v49_v28   ;;  %v372_v35 = vld [vmem:[%s1323_s4] sm:$0xff]  ;;  %v374_v37 = vld [vmem:[%s1323_s4 + $0x10] sm:$0xff]  ;;  %v375_v38 = vld [vmem:[%s1323_s4 + $0x18] sm:$0xff] }
  0x1e   :  { %v376_v39 = vld [vmem:[%s1323_s4 + $0x20] sm:$0xff]  ;;  %v377_v40 = vld [vmem:[%s1323_s4 + $0x28] sm:$0xff]  ;;  %v631_v43 = vld [vmem:[%s1324_s5 + $0x10] sm:$0xff] }
  0x1f   :  { %875 = vmatmul.mubr.msk.f32.gmra.mxu0 %vm142_vm1, %v42_v29  ;;  %74 = vperm.xlu1 %971, %v48_v30   ;;  %v629_v41 = vld [vmem:[%s1324_s5] sm:$0xff]  ;;  %v630_v42 = vld [vmem:[%s1324_s5 + $0x8] sm:$0xff]  ;;  %v632_v44 = vld [vmem:[%s1324_s5 + $0x18] sm:$0xff] }
  0x20   :  { %877 = vmatprep.mubr.msk.f32.mxu0 %vm142_vm1, %v43_v31  ;;  %v378_v45 = vld [vmem:[%s1323_s4 + $0x30] sm:$0xff]  ;;  %v633_v46 = vld [vmem:[%s1324_s5 + $0x20] sm:$0xff]  ;;  %v379_v47 = vld [vmem:[%s1323_s4 + $0x38] sm:$0xff] }
  0x21   :  { %69 = vperm.xlu0 %970, %v47_v32   ;;  %v634_v48 = vld [vmem:[%s1324_s5 + $0x28] sm:$0xff]  ;;  %v380_v49 = vld [vmem:[%s1323_s4 + $0x40] sm:$0xff]  ;;  %v635_v50 = vld [vmem:[%s1324_s5 + $0x30] sm:$0xff] }
  0x22   :  { %v381_v51 = vld [vmem:[%s1323_s4 + $0x48] sm:$0xff]  ;;  %v636_v52 = vld [vmem:[%s1324_s5 + $0x38] sm:$0xff]  ;;  %v382_v53 = vld [vmem:[%s1323_s4 + $0x50] sm:$0xff] }
  0x23   :  { %878 = vmatmul.mubr.msk.f32.gmra.mxu0 %vm142_vm1, %v44_v33  ;;  %64 = vperm.xlu1 %971, %v46_v34   ;;  %v637_v54 = vld [vmem:[%s1324_s5 + $0x40] sm:$0xff]  ;;  %v383_v55 = vld [vmem:[%s1323_s4 + $0x58] sm:$0xff]  ;;  %v638_v56 = vld [vmem:[%s1324_s5 + $0x48] sm:$0xff] }
  0x24   :  { %v384_v57 = vld [vmem:[%s1323_s4 + $0x60] sm:$0xff]  ;;  %v639_v58 = vld [vmem:[%s1324_s5 + $0x50] sm:$0xff]  ;;  %v385_v59 = vld [vmem:[%s1323_s4 + $0x68] sm:$0xff] }
  0x25   :  { %390 = vperm.xlu0 %970, %v372_v35   ;;  %v640_v60 = vld [vmem:[%s1324_s5 + $0x58] sm:$0xff]  ;;  %v386_v61 = vld [vmem:[%s1323_s4 + $0x70] sm:$0xff]  ;;  %v641_v62 = vld [vmem:[%s1324_s5 + $0x60] sm:$0xff] }
  0x26   :  { %v387_v63 = vld [vmem:[%s1323_s4 + $0x78] sm:$0xff]  ;;  %v642_v0 = vld [vmem:[%s1324_s5 + $0x68] sm:$0xff]  ;;  %v643_v1 = vld [vmem:[%s1324_s5 + $0x70] sm:$0xff] }
  0x27   :  { %395 = vperm.xlu1 %971, %v373_v36   ;;  %v644_v2 = vld [vmem:[%s1324_s5 + $0x78] sm:$0xff]  ;;  %v762_v3 = vld [vmem:[#allocation2] sm:$0x1]  ;;  %v362_v5 = vld [vmem:[%s1322_s3 + $0x30] sm:$0xff] }
  0x28   :  { %v356_v4 = vld [vmem:[%s1322_s3] sm:$0xff]  ;;  %921 = vmatprep.mubr.f32.mxu1 %v362_v5 }
  0x29   :  { %400 = vperm.xlu0 %970, %v374_v37   ;;  %912 = vmatprep.mubr.f32.mxu0 %v356_v4 }
  0x2b   :  { %405 = vperm.xlu1 %971, %v375_v38  }
  0x2d   :  { %410 = vperm.xlu0 %970, %v376_v39  }
  0x2f   :  { %415 = vperm.xlu1 %971, %v377_v40  }
  0x31   :  { %647 = vperm.xlu0 %970, %v629_v41  }
  0x33   :  { %652 = vperm.xlu1 %971, %v630_v42  }
  0x35   :  { %657 = vperm.xlu0 %970, %v631_v43  }
  0x37   :  { %662 = vperm.xlu1 %971, %v632_v44  }
  0x39   :  { %420 = vperm.xlu0 %970, %v378_v45  }
  0x3b   :  { %667 = vperm.xlu1 %971, %v633_v46  }
  0x3d   :  { %425 = vperm.xlu0 %970, %v379_v47  }
  0x3f   :  { %672 = vperm.xlu1 %971, %v634_v48  }
  0x41   :  { %430 = vperm.xlu0 %970, %v380_v49  }
  0x43   :  { %677 = vperm.xlu1 %971, %v635_v50  }
  0x45   :  { %435 = vperm.xlu0 %970, %v381_v51  }
  0x47   :  { %682 = vperm.xlu1 %971, %v636_v52  }
  0x49   :  { %440 = vperm.xlu0 %970, %v382_v53  }
  0x4b   :  { %687 = vperm.xlu1 %971, %v637_v54  }
  0x4d   :  { %445 = vperm.xlu0 %970, %v383_v55  }
  0x4f   :  { %692 = vperm.xlu1 %971, %v638_v56  }
  0x51   :  { %450 = vperm.xlu0 %970, %v384_v57  }
  0x53   :  { %697 = vperm.xlu1 %971, %v639_v58  }
  0x55   :  { %455 = vperm.xlu0 %970, %v385_v59  }
  0x57   :  { %702 = vperm.xlu1 %971, %v640_v60  }
  0x59   :  { %460 = vperm.xlu0 %970, %v386_v61  }
  0x5b   :  { %707 = vperm.xlu1 %971, %v641_v62  }
  0x5d   :  { %465 = vperm.xlu0 %970, %v387_v63  }
  0x5f   :  { %712 = vperm.xlu1 %971, %v642_v0  }
  0x61   :  { %717 = vperm.xlu0 %970, %v643_v1  }
  0x63   :  { %722 = vperm.xlu1 %971, %v644_v2  }
  0x65   :  { %765 = vperm.xlu0 %970, %v762_v3  }
  0x80   :  { %v140_v12 = vpop.permute.xlu0 %139 }
  0x82   :  { %v130_v14 = vpop.permute.xlu1 %129 }
  0x84   :  { %v135_v17 = vpop.permute.xlu0 %134 }
  0x86   :  { %v125_v19 = vpop.permute.xlu1 %124 }
  0x88   :  { %v120_v22 = vpop.permute.xlu0 %119 }
  0x8a   :  { %v115_v24 = vpop.permute.xlu1 %114 }
  0x8c   :  { %v110_v28 = vpop.permute.xlu0 %109 }
  0x8e   :  { %v105_v33 = vpop.permute.xlu1 %104 }
  0x90   :  { %v100_v38 = vpop.permute.xlu0 %99 }
  0x92   :  { %v95_v41 = vpop.permute.xlu1 %94 }
  0x94   :  { %v90_v46 = vpop.permute.xlu0 %89 }
  0x96   :  { %v85_v49 = vpop.permute.xlu1 %84 }
  0x98   :  { %v80_v54 = vpop.permute.xlu0 %79 }
  0x9a   :  { %v75_v57 = vpop.permute.xlu1 %74 }
  0x9c   :  { %v70_v62 = vpop.permute.xlu0 %69 }
  0x9e   :  { %v65_v1 = vpop.permute.xlu1 %64 }
  0xc7   :  { %v1256_v6 = vpop.f32.mrf.mxu0 }
  0xc8   :  { %v267_v63 = vadd.f32 %v1256_v6, %v70_v62  ;;  %v357_v6 = vld [vmem:[%s1322_s3 + $0x8] sm:$0xff] }
  0xc9   :  { %v1258_v7 = vpop.f32.mrf.mxu0 }
  0xca   :  { %v262_v2 = vadd.f32 %v1258_v7, %v65_v1  ;;  %v341_v4 = vmax.f32 %v267_v63, 0.0  ;;  %v363_v7 = vld [vmem:[%s1322_s3 + $0x38] sm:$0xff] }
  0xcb   :  { %v1260_v8 = vpop.f32.mrf.mxu0 }
  0xcc   :  { %v277_v58 = vadd.f32 %v1260_v8, %v80_v54  ;;  %v340_v5 = vmax.f32 %v262_v2, 0.0  ;;  %v358_v8 = vld [vmem:[%s1322_s3 + $0x10] sm:$0xff] }
  0xcd   :  { %v1262_v9 = vpop.f32.mrf.mxu0 }
  0xce   :  { %v272_v60 = vadd.f32 %v1262_v9, %v75_v57  ;;  %v343_v0 = vmax.f32 %v277_v58, 0.0  ;;  %v364_v9 = vld [vmem:[%s1322_s3 + $0x40] sm:$0xff] }
  0xcf   :  { %v1264_v10 = vpop.f32.mrf.mxu0 }
  0xd0   :  { %v287_v52 = vadd.f32 %v1264_v10, %v90_v46  ;;  %v342_v3 = vmax.f32 %v272_v60, 0.0  ;;  %v359_v10 = vld [vmem:[%s1322_s3 + $0x18] sm:$0xff] }
  0xd1   :  { %v1266_v11 = vpop.f32.mrf.mxu0 }
  0xd2   :  { %v282_v55 = vadd.f32 %v1266_v11, %v85_v49  ;;  %v345_v59 = vmax.f32 %v287_v52, 0.0  ;;  %v365_v11 = vld [vmem:[%s1322_s3 + $0x48] sm:$0xff] }
  0xd3   :  { %v867_v13 = vpop.f32.mrf.mxu0 }
  0xd4   :  { %v297_v47 = vadd.f32 %v867_v13, %v100_v38  ;;  %v344_v61 = vmax.f32 %v282_v55, 0.0  ;;  %v366_v13 = vld [vmem:[%s1322_s3 + $0x50] sm:$0xff] }
  0xd5   :  { %v291_v15 = vpop.f32.mrf.mxu0 }
  0xd6   :  { %v292_v50 = vadd.f32 %v291_v15, %v95_v41  ;;  %v347_v53 = vmax.f32 %v297_v47, 0.0  ;;  %v367_v15 = vld [vmem:[%s1322_s3 + $0x58] sm:$0xff] }
  0xd7   :  { %v870_v16 = vpop.f32.mrf.mxu0 }
  0xd8   :  { %v307_v42 = vadd.f32 %v870_v16, %v110_v28  ;;  %v346_v56 = vmax.f32 %v292_v50, 0.0  ;;  %v368_v16 = vld [vmem:[%s1322_s3 + $0x60] sm:$0xff] }
  0xd9   :  { %v301_v18 = vpop.f32.mrf.mxu0 }
  0xda   :  { %v302_v44 = vadd.f32 %v301_v18, %v105_v33  ;;  %v349_v48 = vmax.f32 %v307_v42, 0.0  ;;  %v370_v18 = vld [vmem:[%s1322_s3 + $0x70] sm:$0xff] }
  0xdb   :  { %v873_v20 = vpop.f32.mrf.mxu0 }
  0xdc   :  { %v317_v36 = vadd.f32 %v873_v20, %v120_v22  ;;  %v348_v51 = vmax.f32 %v302_v44, 0.0  ;;  %v391_v20 = vpop.permute.xlu0 %390 }
  0xdd   :  { %v311_v21 = vpop.f32.mrf.mxu0 }
  0xde   :  { %v312_v39 = vadd.f32 %v311_v21, %v115_v24  ;;  %v351_v43 = vmax.f32 %v317_v36, 0.0  ;;  %v396_v21 = vpop.permute.xlu1 %395 }
  0xdf   :  { %v876_v23 = vpop.f32.mrf.mxu0 }
  0xe0   :  { %v327_v30 = vadd.f32 %v876_v23, %v130_v14  ;;  %v350_v45 = vmax.f32 %v312_v39, 0.0  ;;  %v361_v14 = vld [vmem:[%s1322_s3 + $0x28] sm:$0xff]  ;;  %v401_v22 = vpop.permute.xlu0 %400 }
  0xe1   :  { %v321_v25 = vpop.f32.mrf.mxu0 }
  0xe2   :  { %v322_v34 = vadd.f32 %v321_v25, %v125_v19  ;;  %v353_v37 = vmax.f32 %v327_v30, 0.0  ;;  %v371_v19 = vld [vmem:[%s1322_s3 + $0x78] sm:$0xff]  ;;  %v406_v23 = vpop.permute.xlu1 %405 }
  0xe3   :  { %v879_v26 = vpop.f32.mrf.mxu0 }
  0xe4   :  { %v337_v27 = vadd.f32 %v879_v26, %v140_v12  ;;  %v352_v40 = vmax.f32 %v322_v34, 0.0  ;;  %v360_v12 = vld [vmem:[%s1322_s3 + $0x20] sm:$0xff]  ;;  %v411_v24 = vpop.permute.xlu0 %410 }
  0xe5   :  { %v331_v29 = vpop.f32.mrf.mxu0 }
  0xe6   :  { %v355_v31 = vmax.f32 %v337_v27, 0.0  ;;  %v332_v32 = vadd.f32 %v331_v29, %v135_v17  ;;  %v369_v17 = vld [vmem:[%s1322_s3 + $0x68] sm:$0xff]  ;;  %v416_v25 = vpop.permute.xlu1 %415  ;;  %s995_s3 = smov [#allocation3]  }
  0xe7   :  { %s780_s27 = sshll.u32 %s995_s3, 4  ;;  %s781_s27 = int_to_ptr.vmem [resolvable:$true] %s780_s27 }
  0xe8   :  { %v354_v35 = vmax.f32 %v332_v32, 0.0  ;;  %880 = vmatprep.subr.mxu0 %v355_v31  ;;  %936 = vmatprep.subr.mxu1 %v355_v31  ;;  %v648_v26 = vpop.permute.xlu0 %647  ;;  %s972_s5 = scalar_lea.vmem %s781_s27, 16  ;;  %s976_s28 = scalar_lea.vmem %s781_s27, 32 }
  0xe9   :  { %881 = vmatpush3.msra.mxu0 %v355_v31  ;;  %952 = vmatpush3.msra.mxu1 %v355_v31  ;;  %p973_p0 = scmp.ne.s32.totalorder %s781_s27, %s972_s5  ;;  %p977_p1 = scmp.lt.s32.totalorder %s781_s27, %s781_s27 }
  0xea   :  { %882 = vmatprep.subr.mxu0 %v354_v35  ;;  %937 = vmatprep.subr.mxu1 %v354_v35  ;;  %v653_v27 = vpop.permute.xlu1 %652  ;;  %p978_p2 = scmp.lt.s32.totalorder %s976_s28, %s972_s5 }
  0xeb   :  { %883 = vmatpush3.msra.mxu0 %v354_v35  ;;  %953 = vmatpush3.msra.mxu1 %v354_v35 }
  0xec   :  { %884 = vmatprep.subr.mxu0 %v353_v37  ;;  %938 = vmatprep.subr.mxu1 %v353_v37  ;;  %v658_v28 = vpop.permute.xlu0 %657  ;;  %p979_p3 = por %p978_p2, %p977_p1 }
  0xed   :  { %885 = vmatpush3.msra.mxu0 %v353_v37  ;;  %954 = vmatpush3.msra.mxu1 %v353_v37 }
  0xee   :  { %886 = vmatprep.subr.mxu0 %v352_v40  ;;  %939 = vmatprep.subr.mxu1 %v352_v40  ;;  %v663_v29 = vpop.permute.xlu1 %662  ;;  %p980_p4 = pnand %p979_p3, %p973_p0 }
  0xef   :  { %887 = vmatpush3.msra.mxu0 %v352_v40  ;;  %955 = vmatpush3.msra.mxu1 %v352_v40 }
  0xf0   :  { %888 = vmatprep.subr.mxu0 %v351_v43  ;;  %940 = vmatprep.subr.mxu1 %v351_v43  ;;  %v421_v30 = vpop.permute.xlu0 %420 }
  0xf1   :  { %889 = vmatpush3.msra.mxu0 %v351_v43  ;;  %956 = vmatpush3.msra.mxu1 %v351_v43 }
  0xf2   :  { %890 = vmatprep.subr.mxu0 %v350_v45  ;;  %941 = vmatprep.subr.mxu1 %v350_v45  ;;  %v668_v31 = vpop.permute.xlu1 %667 }
  0xf3   :  { %891 = vmatpush3.msra.mxu0 %v350_v45  ;;  %957 = vmatpush3.msra.mxu1 %v350_v45 }
  0xf4   :  { %892 = vmatprep.subr.mxu0 %v349_v48  ;;  %942 = vmatprep.subr.mxu1 %v349_v48  ;;  %v426_v32 = vpop.permute.xlu0 %425 }
  0xf5   :  { %893 = vmatpush3.msra.mxu0 %v349_v48  ;;  %958 = vmatpush3.msra.mxu1 %v349_v48 }
  0xf6   :  { %894 = vmatprep.subr.mxu0 %v348_v51  ;;  %943 = vmatprep.subr.mxu1 %v348_v51  ;;  %v673_v33 = vpop.permute.xlu1 %672 }
  0xf7   :  { %895 = vmatpush3.msra.mxu0 %v348_v51  ;;  %959 = vmatpush3.msra.mxu1 %v348_v51 }
  0xf8   :  { %896 = vmatprep.subr.mxu0 %v347_v53  ;;  %944 = vmatprep.subr.mxu1 %v347_v53  ;;  %v431_v34 = vpop.permute.xlu0 %430 }
  0xf9   :  { %897 = vmatpush3.msra.mxu0 %v347_v53  ;;  %960 = vmatpush3.msra.mxu1 %v347_v53 }
  0xfa   :  { %898 = vmatprep.subr.mxu0 %v346_v56  ;;  %945 = vmatprep.subr.mxu1 %v346_v56  ;;  %v678_v35 = vpop.permute.xlu1 %677 }
  0xfb   :  { %899 = vmatpush3.msra.mxu0 %v346_v56  ;;  %961 = vmatpush3.msra.mxu1 %v346_v56 }
  0xfc   :  { %900 = vmatprep.subr.mxu0 %v345_v59  ;;  %946 = vmatprep.subr.mxu1 %v345_v59  ;;  %v436_v36 = vpop.permute.xlu0 %435 }
  0xfd   :  { %901 = vmatpush3.msra.mxu0 %v345_v59  ;;  %962 = vmatpush3.msra.mxu1 %v345_v59 }
  0xfe   :  { %902 = vmatprep.subr.mxu0 %v344_v61  ;;  %947 = vmatprep.subr.mxu1 %v344_v61  ;;  %v683_v37 = vpop.permute.xlu1 %682 }
  0xff   :  { %903 = vmatpush3.msra.mxu0 %v344_v61  ;;  %963 = vmatpush3.msra.mxu1 %v344_v61 }
 0x100   :  { %904 = vmatprep.subr.mxu0 %v343_v0  ;;  %948 = vmatprep.subr.mxu1 %v343_v0  ;;  %v441_v38 = vpop.permute.xlu0 %440 }
 0x101   :  { %905 = vmatpush3.msra.mxu0 %v343_v0  ;;  %964 = vmatpush3.msra.mxu1 %v343_v0 }
 0x102   :  { %906 = vmatprep.subr.mxu0 %v342_v3  ;;  %949 = vmatprep.subr.mxu1 %v342_v3  ;;  %v688_v39 = vpop.permute.xlu1 %687 }
 0x103   :  { %907 = vmatpush3.msra.mxu0 %v342_v3  ;;  %965 = vmatpush3.msra.mxu1 %v342_v3 }
 0x104   :  { %908 = vmatprep.subr.mxu0 %v341_v4  ;;  %950 = vmatprep.subr.mxu1 %v341_v4  ;;  %v446_v45 = vpop.permute.xlu0 %445 }
 0x105   :  { %909 = vmatpush3.msra.mxu0 %v341_v4  ;;  %966 = vmatpush3.msra.mxu1 %v341_v4 }
 0x106   :  { %910 = vmatprep.subr.mxu0 %v340_v5  ;;  %951 = vmatprep.subr.mxu1 %v340_v5  ;;  %v693_v49 = vpop.permute.xlu1 %692 }
 0x107   :  { %911 = vmatpush3.msra.mxu0 %v340_v5  ;;  %967 = vmatpush3.msra.mxu1 %v340_v5 }
 0x108   :  { %913 = vmatmul.mubr.f32.vlgmr.msra.gmra.mxu0 %v357_v6  ;;  %922 = vmatmul.mubr.f32.vlgmr.msra.gmra.mxu1 %v363_v7  ;;  %v451_v59 = vpop.permute.xlu0 %450 }
 0x109   :  { %915 = vmatprep.mubr.f32.mxu0 %v358_v8  ;;  %924 = vmatprep.mubr.f32.mxu1 %v364_v9 }
 0x10a   :  { %v698_v6 = vpop.permute.xlu1 %697 }
 0x10c   :  { %916 = vmatmul.mubr.f32.gmra.mxu0 %v359_v10  ;;  %925 = vmatmul.mubr.f32.gmra.mxu1 %v365_v11 }
 0x10d   :  { %918 = vmatprep.mubr.f32.mxu0 %v360_v12  ;;  %927 = vmatprep.mubr.f32.mxu1 %v366_v13 }
 0x110   :  { %919 = vmatmul.mubr.f32.gmra.mxu0 %v361_v14  ;;  %928 = vmatmul.mubr.f32.gmra.mxu1 %v367_v15 }
 0x111   :  { %930 = vmatprep.mubr.f32.mxu1 %v368_v16 }
 0x114   :  { %931 = vmatmul.mubr.f32.gmra.mxu1 %v369_v17  ;;  %v456_v17 = vpop.permute.xlu0 %455 }
 0x115   :  { %933 = vmatprep.mubr.f32.mxu1 %v370_v18 }
 0x118   :  { %934 = vmatmul.mubr.f32.gmra.mxu1 %v371_v19 }
 0x1c8   :  { %v914_v40 = vpop.f32.mrf.mxu0  ;;  %v923_v41 = vpop.f32.mrf.mxu1 }
 0x1c9   :  { %v540_v42 = vadd.f32 %v914_v40, %v396_v21  ;;  %v570_v7 = vadd.f32 %v923_v41, %v426_v32  ;;  %v461_v41 = vpop.permute.xlu0 %460 }
 0x1ca   :  { %v534_v43 = vpop.f32.mrf.mxu0  ;;  %v564_v44 = vpop.f32.mrf.mxu1 }
 0x1cb   :  { %v535_v46 = vadd.f32 %v534_v43, %v391_v20  ;;  %v614_v50 = vmax.f32 %v540_v42, 0.0  ;;  %v565_v3 = vadd.f32 %v564_v44, %v421_v30  ;;  %v620_v19 = vmax.f32 %v570_v7, 0.0 }
 0x1cc   :  { %v917_v47 = vpop.f32.mrf.mxu0  ;;  %v926_v48 = vpop.f32.mrf.mxu1 }
 0x1cd   :  { %v613_v51 = vmax.f32 %v535_v46, 0.0  ;;  %v550_v52 = vadd.f32 %v917_v47, %v406_v23  ;;  %v726_v60 = vmul.f32 %v653_v27, %v614_v50  ;;  %v619_v13 = vmax.f32 %v565_v3, 0.0  ;;  %v703_v23 = vpop.permute.xlu1 %702 }
 0x1ce   :  { %v544_v53 = vpop.f32.mrf.mxu0  ;;  %v574_v54 = vpop.f32.mrf.mxu1  ;;  %v580_v20 = vadd.f32 %v926_v48, %v436_v36 }
 0x1cf   :  { %v725_v55 = vmul.f32 %v648_v26, %v613_v51  ;;  %v545_v56 = vadd.f32 %v544_v53, %v401_v22  ;;  %v616_v61 = vmax.f32 %v550_v52, 0.0  ;;  %v575_v14 = vadd.f32 %v574_v54, %v431_v34  ;;  %v466_v52 = vpop.permute.xlu0 %465 }
 0x1d0   :  { %v920_v57 = vpop.f32.mrf.mxu0  ;;  %v929_v58 = vpop.f32.mrf.mxu1  ;;  %v622_v30 = vmax.f32 %v580_v20, 0.0 }
 0x1d1   :  { %v615_v62 = vmax.f32 %v545_v56, 0.0  ;;  %v560_v63 = vadd.f32 %v920_v57, %v416_v25  ;;  %v741_v2 = vadd.f32 %v726_v60, %v725_v55  ;;  %v728_v9 = vmul.f32 %v663_v29, %v616_v61  ;;  %v708_v44 = vpop.permute.xlu1 %707 }
 0x1d2   :  { %v554_v0 = vpop.f32.mrf.mxu0  ;;  %v584_v1 = vpop.f32.mrf.mxu1  ;;  %v731_v25 = vmul.f32 %v678_v35, %v619_v13  ;;  %v732_v29 = vmul.f32 %v683_v37, %v620_v19  ;;  %v590_v32 = vadd.f32 %v929_v58, %v446_v45  ;;  %v734_v36 = vmul.f32 %v693_v49, %v622_v30 }
 0x1d3   :  { %v727_v4 = vmul.f32 %v658_v28, %v615_v62  ;;  %v555_v5 = vadd.f32 %v554_v0, %v411_v24  ;;  %v618_v11 = vmax.f32 %v560_v63, 0.0  ;;  %v621_v24 = vmax.f32 %v575_v14, 0.0  ;;  %v718_v49 = vpop.permute.xlu0 %717 }
 0x1d4   :  { %v932_v8 = vpop.f32.mrf.mxu1  ;;  %v585_v27 = vadd.f32 %v584_v1, %v441_v38 }
 0x1d5   :  { %v742_v10 = vadd.f32 %v741_v2, %v727_v4  ;;  %v617_v12 = vmax.f32 %v555_v5, 0.0  ;;  %v730_v21 = vmul.f32 %v673_v33, %v618_v11  ;;  %v733_v34 = vmul.f32 %v688_v39, %v621_v24  ;;  %v713_v55 = vpop.permute.xlu1 %712 }
 0x1d6   :  { %v594_v18 = vpop.f32.mrf.mxu1  ;;  %v624_v33 = vmax.f32 %v590_v32, 0.0  ;;  %v600_v48 = vadd.f32 %v932_v8, %v456_v17  ;;  %v768_v2 = vlaneseq }
 0x1d7   :  { %v729_v15 = vmul.f32 %v668_v31, %v617_v12  ;;  %v743_v16 = vadd.f32 %v742_v10, %v728_v9  ;;  %v623_v31 = vmax.f32 %v585_v27, 0.0  ;;  %v595_v43 = vadd.f32 %v594_v18, %v451_v59  ;;  %v766_v10 = vpop.permute.xlu0 %765 }
 0x1d8   :  { %v935_v28 = vpop.f32.mrf.mxu1  ;;  %v736_v37 = vmul.f32 %v703_v23, %v624_v33  ;;  %v626_v45 = vmax.f32 %v600_v48, 0.0  ;;  %v769_v5 = vshrl.u32 %v768_v2, 7 }
 0x1d9   :  { %v744_v22 = vadd.f32 %v743_v16, %v729_v15  ;;  %v735_v35 = vmul.f32 %v698_v6, %v623_v31  ;;  %v625_v51 = vmax.f32 %v595_v43, 0.0  ;;  %v610_v54 = vadd.f32 %v935_v28, %v466_v52  ;;  %v723_v63 = vpop.permute.xlu1 %722 }
 0x1da   :  { %v604_v46 = vpop.f32.mrf.mxu1  ;;  %v738_v58 = vmul.f32 %v713_v55, %v626_v45  ;;  %v770_v8 = vsub.s32 0, %v769_v5 }
 0x1db   :  { %v745_v26 = vadd.f32 %v744_v22, %v730_v21  ;;  %v605_v38 = vadd.f32 %v604_v46, %v461_v41  ;;  %v737_v39 = vmul.f32 %v708_v44, %v625_v51  ;;  %v628_v60 = vmax.f32 %v610_v54, 0.0 }
 0x1dc   :  { %v771_v12 = vrot.slane %v766_v10, %v770_v8 }
 0x1dd   :  { %v746_v40 = vadd.f32 %v745_v26, %v731_v25  ;;  %v627_v57 = vmax.f32 %v605_v38, 0.0  ;;  %v740_v0 = vmul.f32 %v723_v63, %v628_v60 }
 0x1df   :  { %v747_v42 = vadd.f32 %v746_v40, %v732_v29  ;;  %v739_v61 = vmul.f32 %v718_v49, %v627_v57 }
 0x1e1   :  { %v748_v47 = vadd.f32 %v747_v42, %v733_v34 }
 0x1e3   :  { %v749_v50 = vadd.f32 %v748_v47, %v734_v36 }
 0x1e5   :  { %v750_v53 = vadd.f32 %v749_v50, %v735_v35 }
 0x1e7   :  { %v751_v56 = vadd.f32 %v750_v53, %v736_v37 }
 0x1e9   :  { %v752_v59 = vadd.f32 %v751_v56, %v737_v39 }
 0x1eb   :  { %v753_v62 = vadd.f32 %v752_v59, %v738_v58 }
 0x1ed   :  { %v754_v1 = vadd.f32 %v753_v62, %v739_v61 }
 0x1ef   :  { %v755_v3 = vadd.f32 %v754_v1, %v740_v0 }
 0x1f1   :  { %v756_v4 = vrot.slane %v755_v3, 4 }
 0x1f3   :  { %v757_v6 = vadd.f32 %v756_v4, %v755_v3 }
 0x1f5   :  { %v758_v7 = vrot.slane %v757_v6, 2 }
 0x1f7   :  { %v759_v9 = vadd.f32 %v758_v7, %v757_v6 }
 0x1f9   :  { %v760_v11 = vrot.slane %v759_v9, 1 }
 0x1fb   :  { %v761_v13 = vadd.f32 %v760_v11, %v759_v9 }
 0x1fd   :  { %v772_v14 = vadd.f32 %v771_v12, %v761_v13 }
 0x1ff   :  { %773 = vst [vmem:[#allocation3] sm:$0x1] %v772_v14 }
 0x200   :  { %983 = shalt.err (!%p980_p4)
}
 0x201   :  { %783 = dma.vmem_to_hbm [thread:$0]  %s781_s27, 16, %s1326_s7, [#allocation4]  }
 0x202   :  { %992 = dma.done.wait [#allocation4], 16  }
 0x203   :  { %993 = vsyncadd [#allocation4], 4294967280 }
 0x204   :  { %787 = vsyncpa [#allocation4], 1 }

</bundles_post_ra>
